<compile_context>
chip_gen: v7x
topology: tpu7x:2x2x1
jax: 0.10.0
libtpu: 0.0.40
codegen_flags: <defaults>
</compile_context>

<pallas_src>
import jax
import jax.numpy as jnp
from jax import lax
from jax.experimental import pallas as pl
from jax.experimental.pallas import tpu as pltpu

MAX_LEN = 12          # max_len in the torch module (token reshape only)
HIDDEN = 768          # BERT hidden size
DIM = 20              # self.dim
OUT_DIM = 3           # output_dim

SLAB_N = 128          # single lane-dense column space shared by weights/targets/output
# column layout (identical for W_cat / b_cat / target slab / output slab)
C_R_LO, C_R_HI = 0, DIM                       # 0:20   linear_output_R
C_A_LO, C_A_HI = DIM, 2 * DIM                 # 20:40  linear_output_A
C_O_LO, C_O_HI = 2 * DIM, 2 * DIM + OUT_DIM   # 40:43  numerical_operator_output (collapsed)
C_B = 2 * DIM + OUT_DIM                       # 43     linear_output_B
C_BCE = C_B + 1                               # 44     per-row BCE sum over the 3 operator lanes
C_DRA = C_BCE + 1                             # 45     5*(dR + dA)   (per row)
C_DB = C_DRA + 1                              # 46     0.1*|y_b - out_B| (per row)


def transea_kernel(x_ref, y_ref, w_ref, b_ref, slab_ref):
    tb = x_ref.shape[0]

    # --- whole model = ONE MXU pass: bf16 feeds, f32 accumulate, f32 bias ---
    h = jnp.dot(x_ref[...], w_ref[...], preferred_element_type=jnp.float32) + b_ref[...]
    y = y_ref[...]                                            # lane-aligned targets (f32)

    lane = lax.broadcasted_iota(jnp.int32, (tb, SLAB_N), 1)

    # --- BCEWithLogitsLoss terms, f32, lane-parallel then masked row-reduce ---
    bce_all = jnp.maximum(h, 0.0) - h * y + jnp.log1p(jnp.exp(-jnp.abs(h)))
    o_mask = (lane >= C_O_LO) & (lane < C_O_HI)
    bce_row = jnp.sum(jnp.where(o_mask, bce_all, 0.0), axis=1, keepdims=True)   # (tb, 1)

    # --- manhattan distances, lane-aligned (|out - y| needs no extracts) ---
    absdiff = jnp.abs(h - y)
    dra = jnp.sum(jnp.where(lane < C_A_HI, absdiff, 0.0), axis=1, keepdims=True)  # dR + dA
    db = jnp.sum(jnp.where(lane == C_B, absdiff, 0.0), axis=1, keepdims=True)     # |y_b - out_B|

    # --- output slab: model outputs are already in place; 3 vselect column inserts ---
    slab = jnp.where(lane == C_BCE, bce_row, h)
    slab = jnp.where(lane == C_DRA, 5.0 * dra, slab)
    slab = jnp.where(lane == C_DB, 0.1 * db, slab)
    slab_ref[...] = slab


def pack_params(params):
    """One-time offline packing: collapse the O_1->O_2->O_3 chain (no nonlinearity,
    dropout p=0) and fuse all heads into one lane-dense (768, 128) bf16 matrix whose
    column layout matches the output slab exactly. Biases stay f32."""
    W_O = params["W_O1"] @ params["W_O2"] @ params["W_O3"]                         # (768, 3)
    b_O = (params["b_O1"] @ params["W_O2"] + params["b_O2"]) @ params["W_O3"] + params["b_O3"]

    W_cat = jnp.zeros((HIDDEN, SLAB_N), jnp.float32)
    W_cat = W_cat.at[:, C_R_LO:C_R_HI].set(params["W_R"])
    W_cat = W_cat.at[:, C_A_LO:C_A_HI].set(params["W_A"])
    W_cat = W_cat.at[:, C_O_LO:C_O_HI].set(W_O)
    W_cat = W_cat.at[:, C_B:C_B + 1].set(params["W_B"])

    b_cat = jnp.zeros((1, SLAB_N), jnp.float32)
    b_cat = b_cat.at[:, C_R_LO:C_R_HI].set(params["b_R"])
    b_cat = b_cat.at[:, C_A_LO:C_A_HI].set(params["b_A"])
    b_cat = b_cat.at[:, C_O_LO:C_O_HI].set(b_O)
    b_cat = b_cat.at[:, C_B:C_B + 1].set(params["b_B"])

    return {"W_cat": W_cat.astype(jnp.bfloat16), "b_cat": b_cat}


def pack_targets(y_r, y_a, y_o, y_b):
    """Host-side: one lane-dense (B, 128) f32 target slab (same column layout)."""
    B = y_r.shape[0]
    Y = jnp.zeros((B, SLAB_N), jnp.float32)
    Y = Y.at[:, C_R_LO:C_R_HI].set(y_r)
    Y = Y.at[:, C_A_LO:C_A_HI].set(y_a)
    Y = Y.at[:, C_O_LO:C_O_HI].set(y_o)
    Y = Y.at[:, C_B:C_B + 1].set(y_b)
    return Y


def _round_up(x, m):
    return ((x + m - 1) // m) * m


def transea_forward(pooled_output, y_r, y_a, y_o, y_b, packed):
    """Returns (operator_loss [torch's `distance`], linear_output_R, linear_output_A,
                numerical_operator_output, linear_output_B, distance_P)."""
    B = pooled_output.shape[0]
    x = pooled_output.astype(jnp.bfloat16)          # half the activation DMA bytes
    y_slab = pack_targets(y_r, y_a, y_o, y_b)

    # batch tiling: TB multiple of 8 (f32 sublane), capped at 256; pad batch to a multiple
    B8 = _round_up(B, 8)
    TB = min(B8, 256)
    B_pad = _round_up(B8, TB)
    if B_pad != B:
        x = jnp.pad(x, ((0, B_pad - B), (0, 0)))
        y_slab = jnp.pad(y_slab, ((0, B_pad - B), (0, 0)))

    grid = (B_pad // TB,)
    flops = 2 * B_pad * HIDDEN * SLAB_N + 16 * B_pad * SLAB_N
    bytes_accessed = (packed["W_cat"].size * 2 + packed["b_cat"].size * 4
                      + x.size * 2 + y_slab.size * 4 + B_pad * SLAB_N * 4)

    slab = pl.pallas_call(
        transea_kernel,
        out_shape=jax.ShapeDtypeStruct((B_pad, SLAB_N), jnp.float32),
        grid_spec=pltpu.PrefetchScalarGridSpec(
            num_scalar_prefetch=0,
            grid=grid,
            in_specs=[
                pl.BlockSpec((TB, HIDDEN), lambda i: (i, 0)),     # activation row tile
                pl.BlockSpec((TB, SLAB_N), lambda i: (i, 0)),     # target row tile
                pl.BlockSpec((HIDDEN, SLAB_N), lambda i: (0, 0)), # fused weights, VMEM-resident
                pl.BlockSpec((1, SLAB_N), lambda i: (0, 0)),      # fused bias, VMEM-resident
            ],
            out_specs=pl.BlockSpec((TB, SLAB_N), lambda i: (i, 0)),
        ),
        compiler_params=pltpu.CompilerParams(dimension_semantics=("parallel",)),
        cost_estimate=pl.CostEstimate(flops=flops,
                                      transcendentals=2 * B_pad * SLAB_N,
                                      bytes_accessed=bytes_accessed),
    )(x, y_slab, packed["W_cat"], packed["b_cat"])

    slab = slab[:B]
    out_R = slab[:, C_R_LO:C_R_HI]
    out_A = slab[:, C_A_LO:C_A_HI]
    out_O = slab[:, C_O_LO:C_O_HI]
    out_B = slab[:, C_B:C_B + 1]
    loss = jnp.sum(slab[:, C_BCE]) / (B * OUT_DIM)            # finish BCE mean in the wrapper
    # distance_P = 5*dR + 5*dA + 0.1*dB -> torch broadcasting (B,) + (B,1) = (B, B),
    # formed OUTSIDE the kernel (only lane-sparse / quadratic piece of the model).
    dist_P = slab[:, C_DRA][None, :] + slab[:, C_DB:C_DB + 1]
    return loss, out_R, out_A, out_O, out_B, dist_P


def init_params(key):
    ks = jax.random.split(key, 12)

    def lin(kw, kb, fan_in, fan_out):
        bound = 1.0 / jnp.sqrt(fan_in)
        W = jax.random.uniform(kw, (fan_in, fan_out), jnp.float32, -bound, bound)
        b = jax.random.uniform(kb, (1, fan_out), jnp.float32, -bound, bound)
        return W, b

    p = {}
    p["W_R"], p["b_R"] = lin(ks[0], ks[1], HIDDEN, DIM)
    p["W_A"], p["b_A"] = lin(ks[2], ks[3], HIDDEN, DIM)
    p["W_B"], p["b_B"] = lin(ks[4], ks[5], HIDDEN, 1)
    p["W_O1"], p["b_O1"] = lin(ks[6], ks[7], HIDDEN, 512)
    p["W_O2"], p["b_O2"] = lin(ks[8], ks[9], 512, 256)
    p["W_O3"], p["b_O3"] = lin(ks[10], ks[11], 256, OUT_DIM)
    return p


if __name__ == "__main__":
    key = jax.random.PRNGKey(0)
    k_param, k_x, k_yr, k_ya, k_yo, k_yb = jax.random.split(key, 6)

    B = 4  # batch of questions after reshape(-1, max_len)

    params = init_params(k_param)
    packed = pack_params(params)

    # pooled BERT output stand-in (B, 768)
    pooled_output = jax.random.normal(k_x, (B, HIDDEN), jnp.float32)
    y_r = jax.random.normal(k_yr, (B, DIM), jnp.float32)
    y_a = jax.random.normal(k_ya, (B, DIM), jnp.float32)
    y_o = jax.random.bernoulli(k_yo, 0.5, (B, OUT_DIM)).astype(jnp.float32)
    y_b = jax.random.normal(k_yb, (B, 1), jnp.float32)

    outs = transea_forward(pooled_output, y_r, y_a, y_o, y_b, packed)
    outs = jax.block_until_ready(outs)
    loss, out_R, out_A, out_O, out_B, dist_P = outs

    # --- plain f32 reference (true torch semantics of the forward) ---
    ref_R = pooled_output @ params["W_R"] + params["b_R"]
    ref_A = pooled_output @ params["W_A"] + params["b_A"]
    ref_B = pooled_output @ params["W_B"] + params["b_B"]
    h1 = pooled_output @ params["W_O1"] + params["b_O1"]
    h2 = h1 @ params["W_O2"] + params["b_O2"]
    ref_O = h2 @ params["W_O3"] + params["b_O3"]

    ref_loss = jnp.mean(jnp.maximum(ref_O, 0.0) - ref_O * y_o
                        + jnp.log1p(jnp.exp(-jnp.abs(ref_O))))
    ref_dR = jnp.sum(jnp.abs(ref_R - y_r), axis=1)
    ref_dA = jnp.sum(jnp.abs(ref_A - y_a), axis=1)
    ref_dB = jnp.abs(y_b - ref_B)
    ref_P = 5.0 * ref_dR + 5.0 * ref_dA + 0.1 * ref_dB   # (B,) + (B,1) -> (B, B)

    assert jnp.allclose(loss, ref_loss, atol=2e-2, rtol=2e-2)
    assert jnp.allclose(out_R, ref_R, atol=5e-2, rtol=5e-2)
    assert jnp.allclose(out_A, ref_A, atol=5e-2, rtol=5e-2)
    assert jnp.allclose(out_O, ref_O, atol=3e-2, rtol=5e-2)
    assert jnp.allclose(out_B, ref_B, atol=5e-2, rtol=5e-2)
    assert jnp.allclose(dist_P, ref_P, atol=5e-1, rtol=2e-2)

    print("KERNEL_OK")
</pallas_src>

<mosaic_0001>
module attributes {stable_mosaic.version = 11 : i64} {
  func.func @transea_kernel(%arg0: i32, %arg1: memref<8x768xbf16, #tpu.memory_space<vmem>>, %arg2: memref<8x128xf32, #tpu.memory_space<vmem>>, %arg3: memref<768x128xbf16, #tpu.memory_space<vmem>>, %arg4: memref<1x128xf32, #tpu.memory_space<vmem>>, %arg5: memref<8x128xf32, #tpu.memory_space<vmem>>) attributes {dimension_semantics = [#tpu.dimension_semantics<parallel>], iteration_bounds = array<i64: 1>, scalar_prefetch = 0 : i64, scratch_operands = 0 : i64, tpu.core_type = #tpu.core_type<tc>, window_params = [{transform_indices = @transform_0, window_bounds = array<i64: 8, 768>}, {transform_indices = @transform_1, window_bounds = array<i64: 8, 128>}, {pipeline_mode = #tpu.pipeline_mode<synchronous>, transform_indices = @transform_2, window_bounds = array<i64: 768, 128>}, {pipeline_mode = #tpu.pipeline_mode<synchronous>, transform_indices = @transform_3, window_bounds = array<i64: 1, 128>}, {transform_indices = @transform_4, window_bounds = array<i64: 8, 128>}]} {
    %c0 = arith.constant 0 : index
    %c0_0 = arith.constant 0 : index
    %0 = vector.load %arg1[%c0, %c0_0] : memref<8x768xbf16, #tpu.memory_space<vmem>>, vector<8x768xbf16>
    %c0_1 = arith.constant 0 : index
    %c0_2 = arith.constant 0 : index
    %1 = vector.load %arg3[%c0_1, %c0_2] : memref<768x128xbf16, #tpu.memory_space<vmem>>, vector<768x128xbf16>
    %cst = arith.constant dense<0.000000e+00> : vector<8x128xf32>
    %2 = tpu.matmul %0, %1, %cst {dimension_numbers = #tpu.dot_dimension_numbers<[1], [0], [0], [1], [0, 0, 1, 1], [], []>} : vector<8x768xbf16>, vector<768x128xbf16>, vector<8x128xf32> -> vector<8x128xf32>
    %c0_3 = arith.constant 0 : index
    %c0_4 = arith.constant 0 : index
    %3 = vector.load %arg4[%c0_3, %c0_4] : memref<1x128xf32, #tpu.memory_space<vmem>>, vector<1x128xf32>
    %4 = vector.broadcast %3 : vector<1x128xf32> to vector<8x128xf32>
    %5 = arith.addf %2, %4 : vector<8x128xf32>
    %c0_5 = arith.constant 0 : index
    %c0_6 = arith.constant 0 : index
    %6 = vector.load %arg2[%c0_5, %c0_6] : memref<8x128xf32, #tpu.memory_space<vmem>>, vector<8x128xf32>
    %7 = tpu.iota {dimensions = array<i32: 1>} : vector<8x128xi32>
    %cst_7 = arith.constant 0.000000e+00 : f32
    %8 = vector.broadcast %cst_7 : f32 to vector<8x128xf32>
    %9 = arith.maximumf %5, %8 : vector<8x128xf32>
    %10 = arith.mulf %5, %6 : vector<8x128xf32>
    %11 = arith.subf %9, %10 : vector<8x128xf32>
    %12 = math.absf %5 : vector<8x128xf32>
    %cst_8 = arith.constant 0.000000e+00 : f32
    %13 = vector.broadcast %cst_8 : f32 to vector<8x128xf32>
    %14 = arith.subf %13, %12 : vector<8x128xf32>
    %15 = math.exp %14 : vector<8x128xf32>
    %16 = math.log1p %15 : vector<8x128xf32>
    %17 = arith.addf %11, %16 : vector<8x128xf32>
    %c40_i32 = arith.constant 40 : i32
    %18 = vector.broadcast %c40_i32 : i32 to vector<8x128xi32>
    %19 = arith.cmpi sge, %7, %18 : vector<8x128xi32>
    %c43_i32 = arith.constant 43 : i32
    %20 = vector.broadcast %c43_i32 : i32 to vector<8x128xi32>
    %21 = arith.cmpi slt, %7, %20 : vector<8x128xi32>
    %22 = arith.andi %19, %21 : vector<8x128xi1>
    %cst_9 = arith.constant 0.000000e+00 : f32
    %23 = vector.broadcast %cst_9 : f32 to vector<8x128xf32>
    %24 = arith.select %22, %17, %23 : vector<8x128xi1>, vector<8x128xf32>
    %cst_10 = arith.constant dense<0.000000e+00> : vector<8xf32>
    %25 = vector.multi_reduction <add>, %24, %cst_10 [1] : vector<8x128xf32> to vector<8xf32>
    %26 = vector.shape_cast %25 : vector<8xf32> to vector<8x1xf32>
    %27 = arith.subf %5, %6 : vector<8x128xf32>
    %28 = math.absf %27 : vector<8x128xf32>
    %c40_i32_11 = arith.constant 40 : i32
    %29 = vector.broadcast %c40_i32_11 : i32 to vector<8x128xi32>
    %30 = arith.cmpi slt, %7, %29 : vector<8x128xi32>
    %cst_12 = arith.constant 0.000000e+00 : f32
    %31 = vector.broadcast %cst_12 : f32 to vector<8x128xf32>
    %32 = arith.select %30, %28, %31 : vector<8x128xi1>, vector<8x128xf32>
    %cst_13 = arith.constant dense<0.000000e+00> : vector<8xf32>
    %33 = vector.multi_reduction <add>, %32, %cst_13 [1] : vector<8x128xf32> to vector<8xf32>
    %34 = vector.shape_cast %33 : vector<8xf32> to vector<8x1xf32>
    %c43_i32_14 = arith.constant 43 : i32
    %35 = vector.broadcast %c43_i32_14 : i32 to vector<8x128xi32>
    %36 = arith.cmpi eq, %7, %35 : vector<8x128xi32>
    %cst_15 = arith.constant 0.000000e+00 : f32
    %37 = vector.broadcast %cst_15 : f32 to vector<8x128xf32>
    %38 = arith.select %36, %28, %37 : vector<8x128xi1>, vector<8x128xf32>
    %cst_16 = arith.constant dense<0.000000e+00> : vector<8xf32>
    %39 = vector.multi_reduction <add>, %38, %cst_16 [1] : vector<8x128xf32> to vector<8xf32>
    %40 = vector.shape_cast %39 : vector<8xf32> to vector<8x1xf32>
    %c44_i32 = arith.constant 44 : i32
    %41 = vector.broadcast %c44_i32 : i32 to vector<8x128xi32>
    %42 = arith.cmpi eq, %7, %41 : vector<8x128xi32>
    %43 = vector.shape_cast %26 : vector<8x1xf32> to vector<8x1xf32>
    %44 = vector.broadcast %43 : vector<8x1xf32> to vector<8x128xf32>
    %45 = arith.select %42, %44, %5 : vector<8x128xi1>, vector<8x128xf32>
    %c45_i32 = arith.constant 45 : i32
    %46 = vector.broadcast %c45_i32 : i32 to vector<8x128xi32>
    %47 = arith.cmpi eq, %7, %46 : vector<8x128xi32>
    %cst_17 = arith.constant 5.000000e+00 : f32
    %48 = vector.broadcast %cst_17 : f32 to vector<8x1xf32>
    %49 = arith.mulf %48, %34 : vector<8x1xf32>
    %50 = vector.shape_cast %49 : vector<8x1xf32> to vector<8x1xf32>
    %51 = vector.broadcast %50 : vector<8x1xf32> to vector<8x128xf32>
    %52 = arith.select %47, %51, %45 : vector<8x128xi1>, vector<8x128xf32>
    %c46_i32 = arith.constant 46 : i32
    %53 = vector.broadcast %c46_i32 : i32 to vector<8x128xi32>
    %54 = arith.cmpi eq, %7, %53 : vector<8x128xi32>
    %cst_18 = arith.constant 1.000000e-01 : f32
    %55 = vector.broadcast %cst_18 : f32 to vector<8x1xf32>
    %56 = arith.mulf %55, %40 : vector<8x1xf32>
    %57 = vector.shape_cast %56 : vector<8x1xf32> to vector<8x1xf32>
    %58 = vector.broadcast %57 : vector<8x1xf32> to vector<8x128xf32>
    %59 = arith.select %54, %58, %52 : vector<8x128xi1>, vector<8x128xf32>
    %c0_19 = arith.constant 0 : index
    %c0_20 = arith.constant 0 : index
    %60 = vector.load %arg5[%c0_19, %c0_20] : memref<8x128xf32, #tpu.memory_space<vmem>>, vector<8x128xf32>
    tpu.vector_store %arg5[%c0_19, %c0_20], %59 {strides = array<i32>} : memref<8x128xf32, #tpu.memory_space<vmem>>, vector<8x128xf32>,
    return
  }
  func.func @transform_0(%arg0: i32) -> (i32, i32) {
    %c0_i32 = arith.constant 0 : i32
    %c0_i32_0 = arith.constant 0 : i32
    return %arg0, %c0_i32 : i32, i32
  }
  func.func @transform_1(%arg0: i32) -> (i32, i32) {
    %c0_i32 = arith.constant 0 : i32
    %c0_i32_0 = arith.constant 0 : i32
    return %arg0, %c0_i32 : i32, i32
  }
  func.func @transform_2(%arg0: i32) -> (i32, i32) {
    %c0_i32 = arith.constant 0 : i32
    %c0_i32_0 = arith.constant 0 : i32
    %c0_i32_1 = arith.constant 0 : i32
    return %c0_i32, %c0_i32_0 : i32, i32
  }
  func.func @transform_3(%arg0: i32) -> (i32, i32) {
    %c0_i32 = arith.constant 0 : i32
    %c0_i32_0 = arith.constant 0 : i32
    %c0_i32_1 = arith.constant 0 : i32
    return %c0_i32, %c0_i32_0 : i32, i32
  }
  func.func @transform_4(%arg0: i32) -> (i32, i32) {
    %c0_i32 = arith.constant 0 : i32
    %c0_i32_0 = arith.constant 0 : i32
    return %arg0, %c0_i32 : i32, i32
  }
}

</mosaic_0001>

<bundles_post_ra>
// kernel: tpu_custom_call.1
= control target key start
LH: loop header
LB: loop body
LE: loop exit
PB: predicated region body
PF: predicated region fallthrough
CT: control target
= control target key end

     0   :  { %9 = vsyncpa [#allocation3], 0  ;;  %s1013_s0 = inlined_call_operand.hbm [shape: bf16[8,768], index: 0, kind: input, shape index: {}]   ;;  %s1014_s1 = inlined_call_operand.hbm [shape: f32[8,128], index: 1, kind: input, shape index: {}]   ;;  %s1015_s2 = inlined_call_operand.hbm [shape: bf16[768,128], index: 2, kind: input, shape index: {}]   ;;  %s1016_s3 = inlined_call_operand.vmem [shape: f32[1,128], index: 3, kind: input, shape index: {}]   ;;  %s1017_s4 = inlined_call_operand.hbm [shape: f32[8,128], index: 4, kind: output, shape index: {}]  }
   0x1   :  { %10 = vsyncpa [#allocation6], 0 }
   0x2   :  { %11 = vsyncpa [#allocation4], 0  ;;  %s931_s15 = smov [#allocation5]   ;;  %s932_s17 = smov [#allocation2]  }
   0x3   :  { %s28_s16 = sshll.u32 %s931_s15, 4  ;;  %s18_s18 = sshll.u32 %s932_s17, 4  ;;  %s29_s16 = int_to_ptr.vmem [resolvable:$true] %s28_s16  ;;  %s19_s18 = int_to_ptr.vmem [resolvable:$true] %s18_s18 }
   0x4   :  { %s837_s21 = scalar_lea.hbm %s1014_s1, 128 }
   0x5   :  { %p838_p0 = scmp.ne.s32.totalorder %s1014_s1, %s837_s21  ;;  %p841_p1 = scmp.lt.u32.totalorder %s837_s21, %s1014_s1 }
   0x7   :  { %p843_p2 = pnand %p841_p1, %p838_p0 }
   0x9   :  { %846 = shalt.err (!%p843_p2)
}
   0xa   :  { %s847_s26 = scalar_lea.vmem %s29_s16, 128  ;;  %p852_p4 = scmp.lt.s32.totalorder %s29_s16, %s29_s16 }
   0xb   :  { %p848_p3 = scmp.ne.s32.totalorder %s29_s16, %s847_s26  ;;  %p853_p5 = scmp.lt.s32.totalorder %s847_s26, %s847_s26 }
   0xd   :  { %p854_p6 = por %p853_p5, %p852_p4 }
   0xf   :  { %p855_p7 = pnand %p854_p6, %p848_p3 }
  0x11   :  { %858 = shalt.err (!%p855_p7)
}
  0x12   :  { %31 = dma.hbm_to_vmem [thread:$0]  %s1014_s1, 128, %s29_s16, [#allocation6]  }
  0x13   :  { %s859_s5 = scalar_lea.hbm %s1013_s0, 384 }
  0x14   :  { %p860_p8 = scmp.ne.s32.totalorder %s1013_s0, %s859_s5  ;;  %p863_p9 = scmp.lt.u32.totalorder %s859_s5, %s1013_s0 }
  0x16   :  { %p865_p10 = pnand %p863_p9, %p860_p8 }
  0x18   :  { %868 = shalt.err (!%p865_p10)
}
  0x19   :  { %s869_s10 = scalar_lea.vmem %s19_s18, 384  ;;  %p874_p12 = scmp.lt.s32.totalorder %s19_s18, %s19_s18 }
  0x1a   :  { %p870_p11 = scmp.ne.s32.totalorder %s19_s18, %s869_s10  ;;  %p875_p13 = scmp.lt.s32.totalorder %s869_s10, %s869_s10 }
  0x1c   :  { %p876_p0 = por %p875_p13, %p874_p12 }
  0x1e   :  { %p877_p1 = pnand %p876_p0, %p870_p11 }
  0x20   :  { %880 = shalt.err (!%p877_p1)
}
  0x21   :  { %21 = dma.hbm_to_vmem [thread:$0]  %s1013_s0, 384, %s19_s18, [#allocation3]  }
  0x22   :  { %s933_s12 = smov [#allocation7]   ;;  %s881_s16 = scalar_lea.hbm %s1015_s2, 6144 }
  0x23   :  { %s37_s13 = sshll.u32 %s933_s12, 4  ;;  %p882_p2 = scmp.ne.s32.totalorder %s1015_s2, %s881_s16  ;;  %s38_s13 = int_to_ptr.vmem [resolvable:$true] %s37_s13 }
  0x24   :  { %p885_p3 = scmp.lt.u32.totalorder %s881_s16, %s1015_s2 }
  0x26   :  { %p887_p4 = pnand %p885_p3, %p882_p2 }
  0x28   :  { %890 = shalt.err (!%p887_p4)
}
  0x29   :  { %s891_s22 = scalar_lea.vmem %s38_s13, 6144  ;;  %p896_p6 = scmp.lt.s32.totalorder %s38_s13, %s38_s13 }
  0x2a   :  { %p892_p5 = scmp.ne.s32.totalorder %s38_s13, %s891_s22  ;;  %p897_p7 = scmp.lt.s32.totalorder %s891_s22, %s891_s22 }
  0x2c   :  { %p898_p8 = por %p897_p7, %p896_p6 }
  0x2e   :  { %p899_p9 = pnand %p898_p8, %p892_p5 }
  0x30   :  { %902 = shalt.err (!%p899_p9)
}
  0x31   :  { %s934_s0 = smov 64   ;;  %s935_s18 = smov 4  }
  0x32   :  { %43 = dma.hbm_to_vmem [thread:$0]  %s1015_s2, 6144, %s38_s13, [#allocation6], %s934_s0, %s934_s0, %s935_s18  }
  0x33   :  { %925 = dma.done.wait [#allocation3], 384  }
  0x34   :  { %926 = vsyncadd [#allocation3], 4294966912 }
  0x35   :  { %927 = dma.done.wait [#allocation6], 6272  }
  0x36   :  { %928 = vsyncadd [#allocation6], 4294961024  ;;  %v779_v0 = vld [vmem:[#allocation7 + $0x40] sm:$0xff]   ;;  %v783_v4 = vld [vmem:[#allocation7 + $0x48] sm:$0xff]  }
  0x37   :  { %v780_v1 = vld [vmem:[#allocation7] sm:$0xff]   ;;  %707 = vmatprep.subr.bf16.mxu0 %v779_v0  ;;  %v784_v5 = vld [vmem:[#allocation7 + $0x8] sm:$0xff]   ;;  %v787_v8 = vld [vmem:[#allocation7 + $0x50] sm:$0xff]  }
  0x38   :  { %v781_v2 = vld [vmem:[#allocation7 + $0xc0] sm:$0xff]   ;;  %708 = vmatpush3.bf16.msra.mxu0 %v780_v1  ;;  %v785_v6 = vld [vmem:[#allocation7 + $0xc8] sm:$0xff]   ;;  %v788_v9 = vld [vmem:[#allocation7 + $0x10] sm:$0xff]  }
  0x39   :  { %v782_v3 = vld [vmem:[#allocation7 + $0x80] sm:$0xff]   ;;  %729 = vmatprep.subr.bf16.mxu1 %v781_v2  ;;  %709 = vmatprep.subr.bf16.mxu0 %v783_v4  ;;  %v786_v7 = vld [vmem:[#allocation7 + $0x88] sm:$0xff]   ;;  %v789_v10 = vld [vmem:[#allocation7 + $0xd0] sm:$0xff]  }
  0x3a   :  { %730 = vmatpush3.bf16.msra.mxu1 %v782_v3  ;;  %v790_v11 = vld [vmem:[#allocation7 + $0x90] sm:$0xff]   ;;  %v791_v12 = vld [vmem:[#allocation7 + $0x58] sm:$0xff]   ;;  %v795_v16 = vld [vmem:[#allocation7 + $0x60] sm:$0xff]  }
  0x3b   :  { %731 = vmatprep.subr.bf16.mxu1 %v785_v6  ;;  %v792_v13 = vld [vmem:[#allocation7 + $0x18] sm:$0xff]   ;;  %v796_v17 = vld [vmem:[#allocation7 + $0x20] sm:$0xff]   ;;  %v799_v20 = vld [vmem:[#allocation7 + $0x68] sm:$0xff]   ;;  %v592_v6 = vlaneseq }
  0x3c   :  { %710 = vmatpush3.bf16.msra.mxu0 %v784_v5  ;;  %v793_v14 = vld [vmem:[#allocation7 + $0xd8] sm:$0xff]   ;;  %v797_v18 = vld [vmem:[#allocation7 + $0xe0] sm:$0xff]   ;;  %v800_v21 = vld [vmem:[#allocation7 + $0x28] sm:$0xff]  }
  0x3d   :  { %711 = vmatprep.subr.bf16.mxu0 %v787_v8  ;;  %v794_v15 = vld [vmem:[#allocation7 + $0x98] sm:$0xff]   ;;  %v798_v19 = vld [vmem:[#allocation7 + $0xa0] sm:$0xff]   ;;  %v801_v22 = vld [vmem:[#allocation7 + $0xe8] sm:$0xff]  }
  0x3e   :  { %732 = vmatpush3.bf16.msra.mxu1 %v786_v7  ;;  %v802_v23 = vld [vmem:[#allocation7 + $0xa8] sm:$0xff]   ;;  %v803_v24 = vld [vmem:[#allocation7 + $0x70] sm:$0xff]   ;;  %v807_v28 = vld [vmem:[#allocation7 + $0x78] sm:$0xff]  }
  0x3f   :  { %733 = vmatprep.subr.bf16.mxu1 %v789_v10  ;;  %v804_v25 = vld [vmem:[#allocation7 + $0x30] sm:$0xff]   ;;  %v808_v29 = vld [vmem:[#allocation7 + $0x38] sm:$0xff]   ;;  %v56_v31 = vld [vmem:[#allocation2] sm:$0xff] }
  0x40   :  { %712 = vmatpush3.bf16.msra.mxu0 %v788_v9  ;;  %v805_v26 = vld [vmem:[#allocation7 + $0xf0] sm:$0xff]   ;;  %v809_v30 = vld [vmem:[#allocation7 + $0xf8] sm:$0xff]   ;;  %v653_v32 = vcombine.low %v56_v31, %v56_v31  ;;  %v654_v33 = vcombine.high %v56_v31, %v56_v31  ;;  %v813_v35 = vld [vmem:[#allocation7 + $0x140] sm:$0xff]  }
  0x41   :  { %713 = vmatprep.subr.bf16.mxu0 %v791_v12  ;;  %v806_v27 = vld [vmem:[#allocation7 + $0xb0] sm:$0xff]   ;;  %v812_v34 = vld [vmem:[#allocation7 + $0xb8] sm:$0xff]   ;;  %v57_v36 = vld [vmem:[#allocation2 + $0x8] sm:$0xff] }
  0x42   :  { %734 = vmatpush3.bf16.msra.mxu1 %v790_v11  ;;  %503 = vmatprep.mubr.bf16.mxu0 %v654_v33  ;;  %v655_v37 = vcombine.low %v57_v36, %v57_v36  ;;  %v656_v38 = vcombine.high %v57_v36, %v57_v36  ;;  %v816_v39 = vld [vmem:[#allocation7 + $0x100] sm:$0xff]   ;;  %v817_v40 = vld [vmem:[#allocation7 + $0x148] sm:$0xff]   ;;  %v819_v42 = vld [vmem:[#allocation7 + $0x150] sm:$0xff]  }
  0x43   :  { %735 = vmatprep.subr.bf16.mxu1 %v793_v14  ;;  %v818_v41 = vld [vmem:[#allocation7 + $0x108] sm:$0xff]   ;;  %v820_v43 = vld [vmem:[#allocation7 + $0x110] sm:$0xff]   ;;  %v821_v44 = vld [vmem:[#allocation7 + $0x158] sm:$0xff]  }
  0x44   :  { %714 = vmatpush3.bf16.msra.mxu0 %v792_v13  ;;  %543 = vmatprep.mubr.bf16.mxu1 %v656_v38  ;;  %v822_v45 = vld [vmem:[#allocation7 + $0x118] sm:$0xff]   ;;  %v823_v46 = vld [vmem:[#allocation7 + $0x160] sm:$0xff]   ;;  %v58_v48 = vld [vmem:[#allocation2 + $0x10] sm:$0xff]  ;;  %v593_v13 = vand.u32 127, %v592_v6 }
  0x45   :  { %715 = vmatprep.subr.bf16.mxu0 %v795_v16  ;;  %v824_v47 = vld [vmem:[#allocation7 + $0x120] sm:$0xff]   ;;  %v825_v49 = vld [vmem:[#allocation7 + $0x168] sm:$0xff]   ;;  %v658_v50 = vcombine.high %v58_v48, %v58_v48  ;;  %v827_v52 = vld [vmem:[#allocation7 + $0x170] sm:$0xff]   ;;  %v657_v56 = vcombine.low %v58_v48, %v58_v48 }
  0x46   :  { %736 = vmatpush3.bf16.msra.mxu1 %v794_v15  ;;  %v826_v51 = vld [vmem:[#allocation7 + $0x128] sm:$0xff]   ;;  %v828_v53 = vld [vmem:[#allocation7 + $0x130] sm:$0xff]   ;;  %v829_v54 = vld [vmem:[#allocation7 + $0x178] sm:$0xff]   ;;  %vm623_vm0 = vcmp.eq.s32.totalorder %v593_v13, 43  ;;  %vm619_vm1 = vcmp.lt.s32.totalorder %v593_v13, 40  ;;  %vm611_vm2 = vcmp.ge.s32.totalorder %v593_v13, 40 }
  0x47   :  { %737 = vmatprep.subr.bf16.mxu1 %v797_v18  ;;  %v830_v55 = vld [vmem:[#allocation7 + $0x138] sm:$0xff]   ;;  %v652_v58 = vld [vmem:[%s1016_s3] ss:$0 sm:$0xff]  ;;  %vm612_vm3 = vcmp.lt.s32.totalorder %v593_v13, 43  ;;  %vm627_vm6 = vcmp.eq.s32.totalorder %v593_v13, 44  ;;  %vm629_vm7 = vcmp.eq.s32.totalorder %v593_v13, 45 }
  0x48   :  { %716 = vmatpush3.bf16.msra.mxu0 %v796_v17  ;;  %v591_v12 = vld [vmem:[#allocation5] sm:$0xff]  ;;  %vm613_vm5 = vmand %vm611_vm2, %vm612_vm3  ;;  %s936_s3 = smov [#allocation8]   ;;  %vm632_vm8 = vcmp.eq.s32.totalorder %v593_v13, 46 }
  0x49   :  { %717 = vmatprep.subr.bf16.mxu0 %v799_v20  ;;  %s642_s26 = sshll.u32 %s936_s3, 4  ;;  %s643_s26 = int_to_ptr.vmem [resolvable:$true] %s642_s26 }
  0x4a   :  { %738 = vmatpush3.bf16.msra.mxu1 %v798_v19  ;;  %s903_s27 = scalar_lea.vmem %s643_s26, 128  ;;  %p908_p11 = scmp.lt.s32.totalorder %s643_s26, %s643_s26 }
  0x4b   :  { %739 = vmatprep.subr.bf16.mxu1 %v801_v22  ;;  %p904_p10 = scmp.ne.s32.totalorder %s643_s26, %s903_s27  ;;  %p909_p12 = scmp.lt.s32.totalorder %s903_s27, %s903_s27 }
  0x4c   :  { %718 = vmatpush3.bf16.msra.mxu0 %v800_v21 }
  0x4d   :  { %719 = vmatprep.subr.bf16.mxu0 %v803_v24  ;;  %p910_p13 = por %p909_p12, %p908_p11 }
  0x4e   :  { %740 = vmatpush3.bf16.msra.mxu1 %v802_v23 }
  0x4f   :  { %741 = vmatprep.subr.bf16.mxu1 %v805_v26  ;;  %p911_p0 = pnand %p910_p13, %p904_p10 }
  0x50   :  { %720 = vmatpush3.bf16.msra.mxu0 %v804_v25 }
  0x51   :  { %721 = vmatprep.subr.bf16.mxu0 %v807_v28 }
  0x52   :  { %742 = vmatpush3.bf16.msra.mxu1 %v806_v27 }
  0x53   :  { %743 = vmatprep.subr.bf16.mxu1 %v809_v30 }
  0x54   :  { %722 = vmatpush3.bf16.msra.mxu0 %v808_v29 }
  0x55   :  { %751 = vmatprep.subr.bf16.mxu0 %v813_v35 }
  0x56   :  { %744 = vmatpush3.bf16.msra.mxu1 %v812_v34 }
  0x57   :  { %504 = vmatmul.mubr.bf16.vlgmr.msra.gmra.mrb[0].mxu0 %v653_v32 }
  0x58   :  { %752 = vmatpush3.bf16.msra.mxu0 %v816_v39  ;;  %583 = vmatprep.mubr.bf16.mxu0 %v658_v50 }
  0x59   :  { %544 = vmatmul.mubr.bf16.vlgmr.msra.gmra.mrb[0].mxu1 %v655_v37  ;;  %753 = vmatprep.subr.bf16.mxu0 %v817_v40 }
  0x5c   :  { %754 = vmatpush3.bf16.msra.mxu0 %v818_v41 }
  0x5d   :  { %755 = vmatprep.subr.bf16.mxu0 %v819_v42 }
  0x60   :  { %756 = vmatpush3.bf16.msra.mxu0 %v820_v43 }
  0x61   :  { %757 = vmatprep.subr.bf16.mxu0 %v821_v44 }
  0x64   :  { %758 = vmatpush3.bf16.msra.mxu0 %v822_v45 }
  0x65   :  { %759 = vmatprep.subr.bf16.mxu0 %v823_v46 }
  0x68   :  { %760 = vmatpush3.bf16.msra.mxu0 %v824_v47 }
  0x69   :  { %761 = vmatprep.subr.bf16.mxu0 %v825_v49 }
  0x6c   :  { %762 = vmatpush3.bf16.msra.mxu0 %v826_v51 }
  0x6d   :  { %763 = vmatprep.subr.bf16.mxu0 %v827_v52 }
  0x70   :  { %764 = vmatpush3.bf16.msra.mxu0 %v828_v53 }
  0x71   :  { %765 = vmatprep.subr.bf16.mxu0 %v829_v54 }
  0x74   :  { %766 = vmatpush3.bf16.msra.mxu0 %v830_v55 }
  0x77   :  { %584 = vmatmul.mubr.bf16.vlgmr.msra.gmra.mrb[4].mxu0 %v657_v56 }
 0x12a   :  { %v723_v57 = vpop.f32.mrb[0].mxu0 }
 0x12b   :  { %v724_v59 = vpop.f32.mrb[1].mxu0 }
 0x12c   :  { %v725_v60 = vadd.f32 %v724_v59, %v723_v57  ;;  %v726_v61 = vpop.f32.mrb[2].mxu0  ;;  %v745_v62 = vpop.f32.mrb[0].mxu1 }
 0x12d   :  { %v727_v63 = vpop.f32.mrb[3].mxu0  ;;  %v746_v0 = vpop.f32.mrb[1].mxu1 }
 0x12e   :  { %v506_v1 = vadd.f32 %v725_v60, %v652_v58  ;;  %v747_v2 = vadd.f32 %v746_v0, %v745_v62  ;;  %v748_v3 = vpop.f32.mrb[2].mxu1 }
 0x12f   :  { %v749_v4 = vpop.f32.mrb[3].mxu1 }
 0x130   :  { %v546_v5 = vadd.f32 %v747_v2, %v506_v1 }
 0x14a   :  { %v767_v7 = vpop.f32.mrb[4].mxu0 }
 0x14b   :  { %v768_v8 = vpop.f32.mrb[5].mxu0 }
 0x14c   :  { %v769_v9 = vadd.f32 %v768_v8, %v767_v7  ;;  %v770_v10 = vpop.f32.mrb[6].mxu0 }
 0x14d   :  { %v771_v11 = vpop.f32.mrb[7].mxu0 }
 0x14e   :  { %v586_v14 = vadd.f32 %v769_v9, %v546_v5 }
 0x150   :  { %v597_v15 = vand.u32 2147483647, %v586_v14  ;;  %v617_v16 = vsub.f32 %v586_v14, %v591_v12  ;;  %v595_v26 = vmul.f32 %v591_v12, %v586_v14  ;;  %v594_v27 = vmax.f32 %v586_v14, 0.0 }
 0x152   :  { %v598_v17 = vsub.f32 0.0, %v597_v15  ;;  %v618_v18 = vand.u32 2147483647, %v617_v16  ;;  %v596_v32 = vsub.f32 %v594_v27, %v595_v26 }
 0x154   :  { %v599_v19 = vmul.f32 1.442695, %v598_v17  ;;  %v624_v20 = vsel %vm623_vm0, %v618_v18, 0.0  ;;  %v620_v21 = vsel %vm619_vm1, %v618_v18, 0.0 }
 0x155   :  { %625 = vadd.xlane.f32.xlu1 %v624_v20  ;;  %621 = vadd.xlane.f32.xlu0 %v620_v21 }
 0x156   :  { %833 = vpow2.f32 %v599_v19 }
 0x160   :  { %v834_v22 = vpop.eup %833 }
 0x161   :  { %v601_v23 = vadd.f32 1.0, %v834_v22  ;;  %v604_v24 = vmul.f32 -0.5, %v834_v22  ;;  %v607_v28 = vand.u32 2147483647, %v834_v22 }
 0x163   :  { %835 = vlog2.f32 %v601_v23  ;;  %v605_v25 = vadd.f32 1.0, %v604_v24  ;;  %vm608_vm4 = vcmp.lt.f32.partialorder %v607_v28, 0.0004427343 }
 0x165   :  { %v606_v31 = vmul.f32 %v834_v22, %v605_v25 }
 0x16d   :  { %v836_v29 = vpop.eup %835 }
 0x16e   :  { %v603_v30 = vmul.f32 0.6931472, %v836_v29 }
 0x170   :  { %v609_v33 = vsel %vm608_vm4, %v606_v31, %v603_v30 }
 0x171   :  { %v610_v34 = vadd.f32 %v609_v33, %v596_v32 }
 0x173   :  { %v614_v35 = vsel %vm613_vm5, %v610_v34, 0.0 }
 0x174   :  { %615 = vadd.xlane.f32.xlu0 %v614_v35 }
 0x1e2   :  { %v622_v36 = vpop.xlane.xlu0 %621  ;;  %v626_v37 = vpop.xlane.xlu1 %625 }
 0x1e3   :  { %v630_v38 = vmul.f32 5.0, %v622_v36  ;;  %v633_v40 = vmul.f32 0.1, %v626_v37 }
 0x201   :  { %v616_v39 = vpop.xlane.xlu0 %615 }
 0x202   :  { %v628_v41 = vsel %vm627_vm6, %v616_v39, %v586_v14 }
 0x203   :  { %v631_v42 = vsel %vm629_vm7, %v630_v38, %v628_v41 }
 0x204   :  { %v634_v43 = vsel %vm632_vm8, %v633_v40, %v631_v42 }
 0x205   :  { %635 = vst [vmem:[#allocation8] sm:$0xff] %v634_v43 }
 0x206   :  { %914 = shalt.err (!%p911_p0)
}
 0x207   :  { %s915_s30 = scalar_lea.hbm %s1017_s4, 128 }
 0x208   :  { %p916_p1 = scmp.ne.s32.totalorder %s1017_s4, %s915_s30  ;;  %p919_p2 = scmp.lt.u32.totalorder %s915_s30, %s1017_s4 }
 0x20a   :  { %p921_p3 = pnand %p919_p2, %p916_p1 }
 0x20c   :  { %924 = shalt.err (!%p921_p3)
}
 0x20d   :  { %645 = dma.vmem_to_hbm [thread:$0]  %s643_s26, 128, %s1017_s4, [#allocation4]  }
 0x20e   :  { %929 = dma.done.wait [#allocation4], 128  }
 0x20f   :  { %930 = vsyncadd [#allocation4], 4294967168 }
 0x210   :  { %649 = vsyncpa [#allocation3], 1 }
 0x211   :  { %650 = vsyncpa [#allocation6], 1 }
 0x212   :  { %651 = vsyncpa [#allocation4], 1 }

</bundles_post_ra>
